<compile_context>
chip_gen: v5e
topology: v5e:2x2
jax: 0.10.0
libtpu: 0.0.40
codegen_flags: <defaults>
</compile_context>

<pallas_src>
import jax
import jax.numpy as jnp
from jax.experimental import pallas as pl
from jax.experimental.pallas import tpu as pltpu

IN_FEATURES = 10
OUT_FEATURES = 5
LANE = 128

# Conservative scoped-VMEM budget (v5e default scoped limit is 16 MiB, v7x has
# only 64 MiB physical).  Per batch row the double-buffered working set is
# roughly 2*(128-lane padded input row + 8-sublane output column) plus small
# f32 transients, so this cap keeps us safely inside every generation.
_VMEM_BUDGET_BYTES = 12 * 1024 * 1024


def _linear_kernel(x_ref, w_ref, b_ref, o_ref):
    # x_ref: [tile, IN]   native row-major batch tile of x
    # w_ref: [OUT, IN]    native nn.Linear weight layout, VMEM-resident
    # b_ref: [OUT, 1]     VMEM-resident
    # o_ref: [OUT, tile]  lane-dense tile of y^T (unmasked stores)
    #
    # y^T = W @ x^T: contracting the 10-wide feature axis of both operands lets
    # Mosaic do the tiny transpose on the XLU; output lanes stay batch-dense.
    yt = jax.lax.dot_general(
        w_ref[...],
        x_ref[...],
        dimension_numbers=(((1,), (1,)), ((), ())),
        preferred_element_type=jnp.float32,
        precision=jax.lax.Precision.HIGHEST,
    )
    o_ref[...] = (yt + b_ref[...]).astype(o_ref.dtype)


def _pick_tile(batch, tile_b, itemsize):
    # Double-buffered input (lane-padded 10 -> 128) + double-buffered output
    # (sublane-padded 5 -> 8) + f32 transients for the transposed operand/result.
    per_row = 2 * (LANE + 8) * itemsize + 2 * 16 * 4
    vmem_cap = max(LANE, (_VMEM_BUDGET_BYTES // per_row) // LANE * LANE)
    b_aligned = pl.cdiv(batch, LANE) * LANE
    tile = min(tile_b, b_aligned, vmem_cap)
    return max(LANE, (tile // LANE) * LANE)


def simple_nn_forward(x, weight, bias, *, tile_b=8192, xla_fallback_batch=128,
                      return_transposed=False):
    """nn.Linear(10, 5) forward.  x: [B, 10], weight: [5, 10], bias: [5]."""
    B = x.shape[0]
    out_dtype = x.dtype

    # Small-batch fallback: a standalone pallas_call is pure launch overhead.
    if B <= xla_fallback_batch:
        y = jnp.dot(x, weight.T, preferred_element_type=jnp.float32)
        y = (y + bias[None, :]).astype(out_dtype)
        return y.T if return_transposed else y

    tile = _pick_tile(B, tile_b, jnp.dtype(x.dtype).itemsize)
    grid = pl.cdiv(B, tile)
    bias2d = bias.reshape(OUT_FEATURES, 1).astype(jnp.float32)

    yt = pl.pallas_call(
        _linear_kernel,
        out_shape=jax.ShapeDtypeStruct((OUT_FEATURES, B), out_dtype),
        grid_spec=pltpu.PrefetchScalarGridSpec(
            num_scalar_prefetch=0,
            grid=(grid,),
            in_specs=[
                # x: native contiguous row-block, advances with the grid step.
                pl.BlockSpec((tile, IN_FEATURES), lambda i: (i, 0)),
                # weight / bias: constant index_map -> VMEM-resident.
                pl.BlockSpec((OUT_FEATURES, IN_FEATURES), lambda i: (0, 0)),
                pl.BlockSpec((OUT_FEATURES, 1), lambda i: (0, 0)),
            ],
            out_specs=pl.BlockSpec((OUT_FEATURES, tile), lambda i: (0, i)),
        ),
        compiler_params=pltpu.CompilerParams(
            dimension_semantics=("parallel",),
        ),
    )(x, weight, bias2d)

    # y^T is [OUT, B] lane-dense.  Callers that can consume that layout should
    # pass return_transposed=True and skip this final XLA transpose pass.
    return yt if return_transposed else yt.T


if __name__ == "__main__":
    key = jax.random.PRNGKey(0)
    kw, kb, k1, k2, k3 = jax.random.split(key, 5)

    # Deterministic parameters mimicking nn.Linear's uniform(-1/sqrt(in), +1/sqrt(in)).
    bound = 1.0 / (IN_FEATURES ** 0.5)
    weight = jax.random.uniform(
        kw, (OUT_FEATURES, IN_FEATURES), minval=-bound, maxval=bound, dtype=jnp.float32
    )
    bias = jax.random.uniform(
        kb, (OUT_FEATURES,), minval=-bound, maxval=bound, dtype=jnp.float32
    )

    def ref_fn(xv):
        return xv @ weight.T + bias

    # 1) Small batch -> XLA fallback path.
    x_small = jax.random.normal(k1, (8, IN_FEATURES), dtype=jnp.float32)
    out_small = jax.block_until_ready(simple_nn_forward(x_small, weight, bias))
    assert out_small.shape == (8, OUT_FEATURES)
    assert jnp.allclose(out_small, ref_fn(x_small), atol=1e-5, rtol=1e-5)

    # 2) Kernel path, multi-tile with a partial final block (300 = 2*128 + 44).
    x_mid = jax.random.normal(k2, (300, IN_FEATURES), dtype=jnp.float32)
    out_mid = jax.block_until_ready(
        simple_nn_forward(x_mid, weight, bias, tile_b=128)
    )
    assert out_mid.shape == (300, OUT_FEATURES)
    assert jnp.allclose(out_mid, ref_fn(x_mid), atol=1e-5, rtol=1e-5)

    # 3) Kernel path with the default (large) tile, single grid step.
    x_big = jax.random.normal(k3, (2048, IN_FEATURES), dtype=jnp.float32)
    out_big = jax.block_until_ready(simple_nn_forward(x_big, weight, bias))
    assert out_big.shape == (2048, OUT_FEATURES)
    assert jnp.allclose(out_big, ref_fn(x_big), atol=1e-5, rtol=1e-5)

    print("KERNEL_OK")
</pallas_src>

<mosaic_0001>
module attributes {stable_mosaic.version = 11 : i64} {
  func.func @_linear_kernel(%arg0: i32, %arg1: memref<128x10xf32, #tpu.memory_space<vmem>>, %arg2: memref<5x10xf32, #tpu.memory_space<vmem>>, %arg3: memref<5x1xf32, #tpu.memory_space<vmem>>, %arg4: memref<5x128xf32, #tpu.memory_space<vmem>>) attributes {dimension_semantics = [#tpu.dimension_semantics<parallel>], iteration_bounds = array<i64: 3>, scalar_prefetch = 0 : i64, scratch_operands = 0 : i64, tpu.core_type = #tpu.core_type<tc>, window_params = [{transform_indices = @transform_0, window_bounds = array<i64: 128, 10>}, {pipeline_mode = #tpu.pipeline_mode<synchronous>, transform_indices = @transform_1, window_bounds = array<i64: 5, 10>}, {pipeline_mode = #tpu.pipeline_mode<synchronous>, transform_indices = @transform_2, window_bounds = array<i64: 5, 1>}, {transform_indices = @transform_3, window_bounds = array<i64: 5, 128>}]} {
    %c0 = arith.constant 0 : index
    %c0_0 = arith.constant 0 : index
    %0 = vector.load %arg2[%c0, %c0_0] : memref<5x10xf32, #tpu.memory_space<vmem>>, vector<5x10xf32>
    %c0_1 = arith.constant 0 : index
    %c0_2 = arith.constant 0 : index
    %1 = vector.load %arg1[%c0_1, %c0_2] : memref<128x10xf32, #tpu.memory_space<vmem>>, vector<128x10xf32>
    %cst = arith.constant dense<0.000000e+00> : vector<5x128xf32>
    %2 = tpu.matmul %0, %1, %cst {dimension_numbers = #tpu.dot_dimension_numbers<[1], [1], [0], [0], [0, 0, 1, 0], [], []>, precision = #tpu.contract_precision<fp32>} : vector<5x10xf32>, vector<128x10xf32>, vector<5x128xf32> -> vector<5x128xf32>
    %c0_3 = arith.constant 0 : index
    %c0_4 = arith.constant 0 : index
    %3 = vector.load %arg3[%c0_3, %c0_4] : memref<5x1xf32, #tpu.memory_space<vmem>>, vector<5x1xf32>
    %4 = vector.broadcast %3 : vector<5x1xf32> to vector<5x128xf32>
    %5 = arith.addf %2, %4 : vector<5x128xf32>
    %c0_5 = arith.constant 0 : index
    %c0_6 = arith.constant 0 : index
    %6 = vector.load %arg4[%c0_5, %c0_6] : memref<5x128xf32, #tpu.memory_space<vmem>>, vector<5x128xf32>
    tpu.vector_store %arg4[%c0_5, %c0_6], %5 {strides = array<i32>} : memref<5x128xf32, #tpu.memory_space<vmem>>, vector<5x128xf32>,
    return
  }
  func.func @transform_0(%arg0: i32) -> (i32, i32) {
    %c0_i32 = arith.constant 0 : i32
    %c0_i32_0 = arith.constant 0 : i32
    return %arg0, %c0_i32 : i32, i32
  }
  func.func @transform_1(%arg0: i32) -> (i32, i32) {
    %c0_i32 = arith.constant 0 : i32
    %c0_i32_0 = arith.constant 0 : i32
    %c0_i32_1 = arith.constant 0 : i32
    return %c0_i32, %c0_i32_0 : i32, i32
  }
  func.func @transform_2(%arg0: i32) -> (i32, i32) {
    %c0_i32 = arith.constant 0 : i32
    %c0_i32_0 = arith.constant 0 : i32
    %c0_i32_1 = arith.constant 0 : i32
    return %c0_i32, %c0_i32_0 : i32, i32
  }
  func.func @transform_3(%arg0: i32) -> (i32, i32) {
    %c0_i32 = arith.constant 0 : i32
    %c0_i32_0 = arith.constant 0 : i32
    return %c0_i32, %arg0 : i32, i32
  }
}

</mosaic_0001>

<bundles_post_ra>
// kernel: tpu_custom_call.1
= control target key start
LH: loop header
LB: loop body
LE: loop exit
PB: predicated region body
PF: predicated region fallthrough
CT: control target
= control target key end

     0   :  { %8 = vsyncpa [#allocation3], 0  ;;  %s1177_s0 = inlined_call_operand.vmem [shape: f32[300,10], index: 0, kind: input, shape index: {}]   ;;  %s1178_s1 = inlined_call_operand.vmem [shape: f32[5,10], index: 1, kind: input, shape index: {}]   ;;  %s1179_s2 = inlined_call_operand.vmem [shape: f32[5,1], index: 2, kind: input, shape index: {}]   ;;  %s1180_s3 = inlined_call_operand.hbm [shape: f32[5,300], index: 3, kind: output, shape index: {}]  }
   0x1   :  { %10 = vsyncpa [#allocation3 + $0x1], 0  ;;  %s820_s12 = smov 0   ;;  %s822_s13 = smov 0  }
   0x2   :  { %s824_s14 = smov 0   ;;  %s826_s15 = smov 0  }
   0x3 LB: > { %s841_s16 = sadd.s32 4294967295, %s797_s15   ;;  %s683_s17 = sadd.s32 4294967294, %s797_s15   ;;  %s797_s15 = sphi %s826_s15, %s1186_s15   ;;  %s793_s14 = sphi %s824_s14, %s1185_s14   ;;  %s789_s13 = sphi %s822_s13, %s1184_s13   ;;  %s785_s12 = sphi %s820_s12, %s1183_s12  }
   0x4   : > { %s845_s18 = sadd.s32 1, %s797_s15   ;;  %s91_s19 = sadd.s32 1, %s793_s14 }
   0x5   : > { %s88_s20 = ssub.s32 %s797_s15, %s845_s18  ;;  %p101_p0 = scmp.ne.s32.totalorder %s793_s14, %s789_s13 }
   0x6   : > { %p89_p1 = scmp.eq.s32.totalorder %s88_s20, 0  ;;  %p102_p2 = scmp.eq.s32.totalorder %s841_s16, 2 }
   0x7   : > { %p107_p3 = scmp.ne.s32.totalorder %s789_s13, %s785_s12  ;;  %p108_p4 = scmp.eq.s32.totalorder %s683_s17, 2 }
   0x8   : > { %s856_s21 = scalar_select %p89_p1, %s793_s14, %s91_s19  }
   0x9   : > { %p858_p5 = por %p102_p2, %p101_p0  ;;  %p862_p6 = por %p108_p4, %p107_p3 }
   0xa   : > { %p686_p7 = scmp.ge.s32.totalorder %s797_s15, 1  ;;  %p149_p8 = scmp.lt.s32.totalorder %s797_s15, 4 }
   0xc   : > { %p150_p9 = pnand %p686_p7, %p149_p8 }
   0xd   : > { %s688_s24 = sshll.u32 (!%p150_p9), %s841_s16, 4  ;;  %s174_s6 = sand.u32 (!%p150_p9), 1, %s789_s13  }
   0xe   : > { %153 = sbr.rel (%p150_p9) target bundleno = 292 (0x124), region = 32  ;;  %p182_p10 = scmp.lt.s32.totalorder (!%p150_p9), %s688_s24, 37 }
   0xf   : > { %s687_s7 = sshll.u32 (!%p150_p9), %s174_s6, 3  ;;  %s691_s8 = sshll.u32 (!%p150_p9), %s841_s16, 3 }
  0x10   : > { %s619_s11 = scalar_lea.hbm (!%p150_p9), %s1180_s3, %s691_s8  ;;  %s176_s17 = scalar_lea.vmem (!%p150_p9), [#allocation2], %s687_s7 }
  0x11   : > { %s621_s19 = sshll.u32 (!%p150_p9), %s176_s17, 4  ;;  %s623_s20 = sshll.u32 (!%p150_p9), %s619_s11, 4  ;;  %s622_s19 = int_to_ptr.vmem [resolvable:$true] %s621_s19  ;;  %s624_s20 = int_to_ptr.hbm [resolvable:$true] %s623_s20 }
  0x13   : > { %s1188_s24 = smov (!%p182_p10, %s688_s24), 37  ;;  %vm214_vm0 = vcmask 80896  }
  0x14   : > { %s689_s25 = sshll.u32 %s1188_s24, 3  ;;  %s609_s24 = scalar_lea.sflag [#allocation3], %s174_s6 }
  0x15   : > { %s872_s28 = scalar_lea.vmem %s1177_s0, %s689_s25  ;;  %s749_s25 = sshra.s32 %s624_s20, 4  ;;  %s750_s25 = int_to_ptr.hbm [resolvable:$true] %s749_s25 }
  0x16   : > { %v207_v0 = vld [vmem:[%s872_s28 + $0x78] sm:$0xff]  ;;  %v206_v1 = vld [vmem:[%s872_s28 + $0x70] sm:$0xff]  ;;  %v205_v2 = vld [vmem:[%s872_s28 + $0x68] sm:$0xff]  ;;  %s751_s16 = scalar_lea.hbm %s750_s25, 8  ;;  %p756_p0 = scmp.lt.s32.totalorder %s750_s25, %s1180_s3 }
  0x17   : > { %v264_v3 = vsel %vm214_vm0, %v207_v0, 0  ;;  %v261_v4 = vsel %vm214_vm0, %v206_v1, 0  ;;  %v258_v5 = vsel %vm214_vm0, %v205_v2, 0  ;;  %v204_v6 = vld [vmem:[%s872_s28 + $0x60] sm:$0xff]  ;;  %v203_v7 = vld [vmem:[%s872_s28 + $0x58] sm:$0xff]  ;;  %v202_v17 = vld [vmem:[%s872_s28 + $0x50] sm:$0xff]  ;;  %p752_p11 = scmp.ne.s32.totalorder %s750_s25, %s751_s16 }
  0x18   : > { %v882_v8 = vand.u32 4294901760, %v264_v3  ;;  %v884_v9 = vand.u32 4294901760, %v261_v4  ;;  %v886_v10 = vand.u32 4294901760, %v258_v5  ;;  %v255_v11 = vsel %vm214_vm0, %v204_v6, 0  ;;  %v201_v26 = vld [vmem:[%s872_s28 + $0x48] sm:$0xff]  ;;  %v200_v34 = vld [vmem:[%s872_s28 + $0x40] sm:$0xff] }
  0x19   : > { %v889_v12 = vand.u32 4294901760, %v255_v11  ;;  %v252_v16 = vsel %vm214_vm0, %v203_v7, 0  ;;  %v249_v21 = vsel %vm214_vm0, %v202_v17, 0  ;;  %v246_v29 = vsel %vm214_vm0, %v201_v26, 0  ;;  %v199_v41 = vld [vmem:[%s872_s28 + $0x38] sm:$0xff]  ;;  %v198_v48 = vld [vmem:[%s872_s28 + $0x30] sm:$0xff]  ;;  %p753_p12 = pnand %p752_p11, %p858_p5 }
  0x1a   : > { %267 = vmatpush.xpose.msra.mxu0 %v882_v8  ;;  %v893_v13 = vsub.f32 %v264_v3, %v882_v8  ;;  %v896_v14 = vsub.f32 %v261_v4, %v884_v9  ;;  %v899_v15 = vsub.f32 %v258_v5, %v886_v10  ;;  %463 = vmatpush.xpose.msra.mxu3 %v882_v8  ;;  %v907_v20 = vand.u32 4294901760, %v252_v16  ;;  %v197_v55 = vld [vmem:[%s872_s28 + $0x28] sm:$0xff]  ;;  %v196_v62 = vld [vmem:[%s872_s28 + $0x20] sm:$0xff]  ;;  %v195_v5 = vld [vmem:[%s872_s28 + $0x18] sm:$0xff] }
  0x1b   : > { %v919_v25 = vsub.f32 %v255_v11, %v889_v12  ;;  %v924_v28 = vand.u32 4294901760, %v249_v21  ;;  %v938_v35 = vand.u32 4294901760, %v246_v29  ;;  %v243_v36 = vsel %vm214_vm0, %v200_v34, 0  ;;  %v193_v34 = vld [vmem:[%s872_s28 + $0x8] sm:$0xff]  ;;  %p754_p13 = pneg %p753_p12 }
  0x1c   : > { %v309_v18 = vand.u32 4294901760, %v893_v13  ;;  %v315_v19 = vand.u32 4294901760, %v896_v14  ;;  %410 = vmatpush.xpose.msra.mxu2 %v893_v13  ;;  %v321_v24 = vand.u32 4294901760, %v899_v15  ;;  %v933_v33 = vsub.f32 %v252_v16, %v907_v20 }
  0x1d   : > { %v327_v32 = vand.u32 4294901760, %v919_v25  ;;  %v947_v40 = vsub.f32 %v249_v21, %v924_v28  ;;  %v953_v42 = vsub.f32 %v246_v29, %v938_v35  ;;  %v955_v43 = vand.u32 4294901760, %v243_v36 }
  0x1e   : > { %v310_v22 = vsub.f32 %v893_v13, %v309_v18  ;;  %269 = vmatpush.xpose.msra.mxu0 %v884_v9  ;;  %v316_v23 = vsub.f32 %v896_v14, %v315_v19  ;;  %465 = vmatpush.xpose.msra.mxu3 %v884_v9  ;;  %v322_v31 = vsub.f32 %v899_v15, %v321_v24  ;;  %v333_v39 = vand.u32 4294901760, %v933_v33  ;;  %v191_v13 = vld [vmem:[%s1178_s1] sm:$0x1f] }
  0x1f   : > { %v328_v38 = vsub.f32 %v919_v25, %v327_v32  ;;  %v339_v46 = vand.u32 4294901760, %v947_v40  ;;  %v240_v47 = vsel %vm214_vm0, %v199_v41, 0  ;;  %v345_v49 = vand.u32 4294901760, %v953_v42 }
  0x20   : > { %v311_v27 = vand.u32 4294901760, %v310_v22  ;;  %413 = vmatpush.xpose.msra.mxu2 %v896_v14  ;;  %v317_v30 = vand.u32 4294901760, %v316_v23  ;;  %v323_v37 = vand.u32 4294901760, %v322_v31  ;;  %v334_v45 = vsub.f32 %v933_v33, %v333_v39  ;;  %v194_v22 = vld [vmem:[%s872_s28 + $0x10] sm:$0xff] }
  0x21   : > { %v329_v44 = vand.u32 4294901760, %v328_v38  ;;  %v968_v50 = vsub.f32 %v243_v36, %v955_v43  ;;  %v340_v52 = vsub.f32 %v947_v40, %v339_v46  ;;  %v974_v53 = vand.u32 4294901760, %v240_v47 }
  0x22   : > { %312 = vmatpush.xpose.msra.mxu1 %v311_v27  ;;  %271 = vmatpush.xpose.msra.mxu0 %v886_v10  ;;  %v335_v51 = vand.u32 4294901760, %v334_v45  ;;  %v237_v54 = vsel %vm214_vm0, %v198_v48, 0  ;;  %v346_v56 = vsub.f32 %v953_v42, %v345_v49  ;;  %v234_v61 = vsel %vm214_vm0, %v197_v55, 0 }
  0x23   : > { %467 = vmatpush.xpose.msra.mxu3 %v886_v10  ;;  %v351_v57 = vand.u32 4294901760, %v968_v50  ;;  %v341_v58 = vand.u32 4294901760, %v340_v52  ;;  %v986_v59 = vsub.f32 %v240_v47, %v974_v53  ;;  %v988_v60 = vand.u32 4294901760, %v237_v54  ;;  %v192_v47 = vld [vmem:[%s872_s28] sm:$0xff]  ;;  %s755_s28 = scalar_lea.hbm %s1180_s3, 24 }
  0x24   : > { %416 = vmatpush.xpose.msra.mxu2 %v899_v15  ;;  %v347_v63 = vand.u32 4294901760, %v346_v56  ;;  %v1002_v3 = vand.u32 4294901760, %v234_v61  ;;  %v231_v4 = vsel %vm214_vm0, %v196_v62, 0  ;;  %v228_v21 = vsel %vm214_vm0, %v195_v5, 0  ;;  %p757_p1 = scmp.lt.s32.totalorder %s755_s28, %s751_s16 }
  0x25   : > { %v352_v0 = vsub.f32 %v968_v50, %v351_v57  ;;  %v357_v1 = vand.u32 4294901760, %v986_v59  ;;  %v1000_v2 = vsub.f32 %v237_v54, %v988_v60  ;;  %v1008_v6 = vand.u32 4294901760, %v231_v4 }
  0x26   : > { %318 = vmatpush.xpose.msra.mxu1 %v317_v30  ;;  %273 = vmatpush.xpose.msra.mxu0 %v889_v12  ;;  %v1016_v17 = vsub.f32 %v234_v61, %v1002_v3  ;;  %v1030_v30 = vand.u32 4294901760, %v228_v21  ;;  %v225_v31 = vsel %vm214_vm0, %v194_v22, 0  ;;  %v222_v45 = vsel %vm214_vm0, %v193_v34, 0  ;;  %p758_p2 = por %p757_p1, %p756_p0 }
  0x27   : > { %469 = vmatpush.xpose.msra.mxu3 %v889_v12  ;;  %v353_v7 = vand.u32 4294901760, %v352_v0  ;;  %v358_v11 = vsub.f32 %v986_v59, %v357_v1  ;;  %v363_v16 = vand.u32 4294901760, %v1000_v2  ;;  %v1023_v23 = vsub.f32 %v231_v4, %v1008_v6 }
  0x28   : > { %419 = vmatpush.xpose.msra.mxu2 %v919_v25  ;;  %v369_v29 = vand.u32 4294901760, %v1016_v17  ;;  %v1042_v41 = vsub.f32 %v228_v21, %v1030_v30  ;;  %v1058_v55 = vand.u32 4294901760, %v222_v45  ;;  %v219_v56 = vsel %vm214_vm0, %v192_v47, 0  ;;  %p759_p3 = pnand %p758_p2, %p754_p13 }
  0x29   : > { %v359_v26 = vand.u32 4294901760, %v358_v11  ;;  %v364_v27 = vsub.f32 %v1000_v2, %v363_v16  ;;  %v375_v36 = vand.u32 4294901760, %v1023_v23  ;;  %v1071_v0 = vand.u32 4294901760, %v219_v56 }
  0x2a   : > { %324 = vmatpush.xpose.msra.mxu1 %v323_v37  ;;  %275 = vmatpush.xpose.msra.mxu0 %v907_v20  ;;  %v370_v38 = vsub.f32 %v1016_v17, %v369_v29  ;;  %v381_v52 = vand.u32 4294901760, %v1042_v41  ;;  %v216_v14 = vsel %vm214_vm0, %v191_v13, 0 }
  0x2b   : > { %471 = vmatpush.xpose.msra.mxu3 %v907_v20  ;;  %v365_v37 = vand.u32 4294901760, %v364_v27  ;;  %v376_v48 = vsub.f32 %v1023_v23, %v375_v36  ;;  %v1081_v11 = vsub.f32 %v219_v56, %v1071_v0 }
  0x2c   : > { %422 = vmatpush.xpose.msra.mxu2 %v933_v33  ;;  %v382_v61 = vsub.f32 %v1042_v41, %v381_v52 }
  0x2e   : > { %330 = vmatpush.xpose.msra.mxu1 %v329_v44  ;;  %277 = vmatpush.xpose.msra.mxu0 %v924_v28  ;;  %v1044_v44 = vand.u32 4294901760, %v225_v31  ;;  %v383_v4 = vand.u32 4294901760, %v382_v61 }
  0x2f   : > { %473 = vmatpush.xpose.msra.mxu3 %v924_v28 }
  0x30   : > { %425 = vmatpush.xpose.msra.mxu2 %v947_v40  ;;  %v1056_v54 = vsub.f32 %v225_v31, %v1044_v44 }
  0x32   : > { %336 = vmatpush.xpose.msra.mxu1 %v335_v51  ;;  %279 = vmatpush.xpose.msra.mxu0 %v938_v35  ;;  %v371_v51 = vand.u32 4294901760, %v370_v38  ;;  %v387_v62 = vand.u32 4294901760, %v1056_v54 }
  0x33   : > { %475 = vmatpush.xpose.msra.mxu3 %v938_v35 }
  0x34   : > { %428 = vmatpush.xpose.msra.mxu2 %v953_v42  ;;  %v388_v5 = vsub.f32 %v1056_v54, %v387_v62 }
  0x36   : > { %342 = vmatpush.xpose.msra.mxu1 %v341_v58  ;;  %281 = vmatpush.xpose.msra.mxu0 %v955_v43  ;;  %v377_v58 = vand.u32 4294901760, %v376_v48  ;;  %v389_v21 = vand.u32 4294901760, %v388_v5 }
  0x37   : > { %477 = vmatpush.xpose.msra.mxu3 %v955_v43 }
  0x38   : > { %431 = vmatpush.xpose.msra.mxu2 %v968_v50 }
  0x3a   : > { %348 = vmatpush.xpose.msra.mxu1 %v347_v63  ;;  %283 = vmatpush.xpose.msra.mxu0 %v974_v53  ;;  %v1069_v63 = vsub.f32 %v222_v45, %v1058_v55 }
  0x3b   : > { %479 = vmatpush.xpose.msra.mxu3 %v974_v53 }
  0x3c   : > { %434 = vmatpush.xpose.msra.mxu2 %v986_v59 }
  0x3e   : > { %354 = vmatpush.xpose.msra.mxu1 %v353_v7  ;;  %285 = vmatpush.xpose.msra.mxu0 %v988_v60  ;;  %v393_v7 = vand.u32 4294901760, %v1069_v63 }
  0x3f   : > { %481 = vmatpush.xpose.msra.mxu3 %v988_v60 }
  0x40   : > { %437 = vmatpush.xpose.msra.mxu2 %v1000_v2  ;;  %v394_v22 = vsub.f32 %v1069_v63, %v393_v7 }
  0x42   : > { %360 = vmatpush.xpose.msra.mxu1 %v359_v26  ;;  %287 = vmatpush.xpose.msra.mxu0 %v1002_v3  ;;  %v399_v26 = vand.u32 4294901760, %v1081_v11  ;;  %v395_v27 = vand.u32 4294901760, %v394_v22 }
  0x43   : > { %483 = vmatpush.xpose.msra.mxu3 %v1002_v3 }
  0x44   : > { %440 = vmatpush.xpose.msra.mxu2 %v1016_v17  ;;  %v400_v31 = vsub.f32 %v1081_v11, %v399_v26 }
  0x46   : > { %366 = vmatpush.xpose.msra.mxu1 %v365_v37  ;;  %289 = vmatpush.xpose.msra.mxu0 %v1008_v6  ;;  %v401_v34 = vand.u32 4294901760, %v400_v31 }
  0x47   : > { %485 = vmatpush.xpose.msra.mxu3 %v1008_v6 }
  0x48   : > { %443 = vmatpush.xpose.msra.mxu2 %v1023_v23 }
  0x4a   : > { %372 = vmatpush.xpose.msra.mxu1 %v371_v51  ;;  %291 = vmatpush.xpose.msra.mxu0 %v1030_v30 }
  0x4b   : > { %487 = vmatpush.xpose.msra.mxu3 %v1030_v30 }
  0x4c   : > { %446 = vmatpush.xpose.msra.mxu2 %v1042_v41 }
  0x4e   : > { %378 = vmatpush.xpose.msra.mxu1 %v377_v58  ;;  %293 = vmatpush.xpose.msra.mxu0 %v1044_v44 }
  0x4f   : > { %489 = vmatpush.xpose.msra.mxu3 %v1044_v44 }
  0x50   : > { %449 = vmatpush.xpose.msra.mxu2 %v1056_v54 }
  0x52   : > { %384 = vmatpush.xpose.msra.mxu1 %v383_v4  ;;  %295 = vmatpush.xpose.msra.mxu0 %v1058_v55 }
  0x53   : > { %491 = vmatpush.xpose.msra.mxu3 %v1058_v55 }
  0x54   : > { %452 = vmatpush.xpose.msra.mxu2 %v1069_v63 }
  0x56   : > { %390 = vmatpush.xpose.msra.mxu1 %v389_v21  ;;  %297 = vmatpush.xpose.msra.mxu0 %v1071_v0 }
  0x57   : > { %493 = vmatpush.xpose.msra.mxu3 %v1071_v0 }
  0x58   : > { %455 = vmatpush.xpose.msra.mxu2 %v1081_v11 }
  0x5a   : > { %504 = vmatpush.xpose.msrb.mxu0 %v309_v18  ;;  %396 = vmatpush.xpose.msra.mxu1 %v395_v27 }
  0x5e   : > { %508 = vmatpush.xpose.msrb.mxu0 %v315_v19  ;;  %402 = vmatpush.xpose.msra.mxu1 %v401_v34  ;;  %v208_v19 = vld [vmem:[%s1179_s2] sm:$0x1f] }
  0x62   : > { %571 = vmatpush.xpose.msrb.mxu1 %v882_v8  ;;  %512 = vmatpush.xpose.msrb.mxu0 %v321_v24  ;;  %v298_v8 = vand.u32 4294901760, %v216_v14 }
  0x64   : > { %404 = vmatmul.f32.vlgmr.msra.gmra.mxu1 %v298_v8 }
  0x66   : > { %573 = vmatpush.xpose.msrb.mxu1 %v884_v9  ;;  %516 = vmatpush.xpose.msrb.mxu0 %v327_v32  ;;  %v299_v9 = vsub.f32 %v216_v14, %v298_v8 }
  0x68   : > { %458 = vmatmul.f32.vlgmr.msra.gmra.mxu2 %v299_v9  ;;  %v300_v15 = vand.u32 4294901760, %v299_v9 }
  0x6a   : > { %575 = vmatpush.xpose.msrb.mxu1 %v886_v10  ;;  %520 = vmatpush.xpose.msrb.mxu0 %v333_v39  ;;  %v301_v10 = vsub.f32 %v299_v9, %v300_v15 }
  0x6b   : > { %497 = vmatmul.f32.vlgmr.msra.gmra.mxu3 %v300_v15 }
  0x6c   : > { %v302_v18 = vand.u32 4294901760, %v301_v10 }
  0x6e   : > { %577 = vmatpush.xpose.msrb.mxu1 %v889_v12  ;;  %524 = vmatpush.xpose.msrb.mxu0 %v339_v46  ;;  %v799_v12 = vmov 0  }
  0x6f   : > { %303 = vmatmul.f32.vlgmr.msra.gmra.mxu0 %v302_v18  ;;  %734 = vset.pattern.permute.xlu0 %v799_v12 }
  0x70   : > { %211 = vperm.xlu0 %734, %v208_v19  }
  0x72   : > { %579 = vmatpush.xpose.msrb.mxu1 %v907_v20  ;;  %528 = vmatpush.xpose.msrb.mxu0 %v345_v49 }
  0x76   : > { %581 = vmatpush.xpose.msrb.mxu1 %v924_v28  ;;  %532 = vmatpush.xpose.msrb.mxu0 %v351_v57 }
  0x7a   : > { %583 = vmatpush.xpose.msrb.mxu1 %v938_v35  ;;  %536 = vmatpush.xpose.msrb.mxu0 %v357_v1 }
  0x7e   : > { %585 = vmatpush.xpose.msrb.mxu1 %v955_v43  ;;  %540 = vmatpush.xpose.msrb.mxu0 %v363_v16 }
  0x82   : > { %587 = vmatpush.xpose.msrb.mxu1 %v974_v53  ;;  %544 = vmatpush.xpose.msrb.mxu0 %v369_v29 }
  0x86   : > { %589 = vmatpush.xpose.msrb.mxu1 %v988_v60  ;;  %548 = vmatpush.xpose.msrb.mxu0 %v375_v36 }
  0x8a   : > { %591 = vmatpush.xpose.msrb.mxu1 %v1002_v3  ;;  %552 = vmatpush.xpose.msrb.mxu0 %v381_v52 }
  0x8e   : > { %593 = vmatpush.xpose.msrb.mxu1 %v1008_v6  ;;  %556 = vmatpush.xpose.msrb.mxu0 %v387_v62 }
  0x92   : > { %595 = vmatpush.xpose.msrb.mxu1 %v1030_v30  ;;  %560 = vmatpush.xpose.msrb.mxu0 %v393_v7 }
  0x96   : > { %597 = vmatpush.xpose.msrb.mxu1 %v1044_v44  ;;  %564 = vmatpush.xpose.msrb.mxu0 %v399_v26 }
  0x99   : > { %566 = vmatmul.f32.vlgmr.msrb.gmra.mxu0 %v298_v8 }
  0x9a   : > { %599 = vmatpush.xpose.msrb.mxu1 %v1058_v55 }
  0x9e   : > { %601 = vmatpush.xpose.msrb.mxu1 %v1071_v0 }
  0xa1   : > { %603 = vmatmul.f32.vlgmr.msrb.gmra.mxu1 %v298_v8 }
  0xe1   : > { %v405_v28 = vpop.f32.mrf.mxu1 }
  0xe2   : > { %v212_v20 = vpop.permute.xlu0 %211 }
  0xeb   : > { %v459_v33 = vpop.f32.mrf.mxu2 }
  0xec   : > { %v304_v24 = vpop.f32.mrf.mxu0 }
  0xed   : > { %v305_v25 = vadd.f32 %v304_v24, %v212_v20 }
  0xee   : > { %v498_v39 = vpop.f32.mrf.mxu3 }
  0xef   : > { %v406_v32 = vadd.f32 %v405_v28, %v305_v25 }
  0xf1   : > { %v460_v35 = vadd.f32 %v459_v33, %v406_v32 }
  0xf3   : > { %v499_v40 = vadd.f32 %v498_v39, %v460_v35 }
 0x116   : > { %v567_v42 = vpop.f32.mrf.mxu0 }
 0x117   : > { %v568_v43 = vadd.f32 %v567_v42, %v499_v40 }
 0x11e   : > { %v604_v46 = vpop.f32.mrf.mxu1 }
 0x11f   : > { %v605_v49 = vadd.f32 %v604_v46, %v568_v43 }
 0x121   : > { %607 = vst [vmem:[%s176_s17] sm:$0x1f] %v605_v49 }
 0x122   : > { %762 = shalt.err (!%p759_p3)
}
 0x123   : > { %694 = dma.vmem_to_hbm [thread:$0]  (%p858_p5), %s622_s19, 128, %s624_s20, %s609_s24  }
 0x124 PF: > { %p700_p4 = scmp.ge.s32.totalorder %s797_s15, 2  ;;  %s635_s4 = sand.u32 1, %s785_s12  }
 0x125   : > { %s636_s5 = scalar_lea.sflag [#allocation3], %s635_s4 }
 0x126   : > { %p697_p7 = pnand %p700_p4, %p862_p6 }
 0x128   : > { %p698_p8 = pneg %p697_p7 }
 0x12a   : > { %780 = dma.done.wait (%p698_p8), %s636_s5, 128  }
 0x12b   : > { %782 = vsyncadd (%p698_p8), %s636_s5, 4294967168  ;;  %p13_p9 = scmp.ge.s32.totalorder %s845_s18, 5   ;;  %s1183_s12 = smov %s789_s13 }
 0x12c   : > { %s1184_s13 = smov %s793_s14  ;;  %s1185_s14 = smov %s856_s21 }
 0x12d   : > { %s1186_s15 = smov %s845_s18  ;;  %15 = sbr.rel (!%p13_p9) target bundleno = 3 (0x3), region = 67 }
 0x132   :  { %642 = vsyncpa [#allocation3], 1 }
 0x133   :  { %644 = vsyncpa [#allocation3 + $0x1], 1 }

</bundles_post_ra>
